<compile_context>
chip_gen: v5e
topology: v5e:2x2
jax: 0.10.0
libtpu: 0.0.40
codegen_flags: <defaults>
</compile_context>

<pallas_src>
import jax
import jax.numpy as jnp
from jax.experimental import pallas as pl
from jax.experimental.pallas import tpu as pltpu


def _deno_kernel_valid(x_ref, o_ref):
    """Block: x (TB, H, W) -> o (TB, H-2, W-2). Valid-width output."""
    x = x_ref[...].astype(jnp.float32)
    Ho = o_ref.shape[1]
    Wo = o_ref.shape[2]
    # Separable stencil: vertical [1, 2, 1] (sublane-offset adds) ...
    v = x[:, 0:Ho, :] + 2.0 * x[:, 1:1 + Ho, :] + x[:, 2:2 + Ho, :]
    # ... then horizontal [-1, 0, 1]: a single pair of lane-offset slices.
    out = v[:, :, 2:2 + Wo] - v[:, :, 0:Wo]
    o_ref[...] = out.astype(o_ref.dtype)


def _deno_kernel_full(x_ref, o_ref):
    """Block: x (TB, H, W) -> o (TB, H-2, W). Lane-dense full-width output.

    The last two output columns hold wrapped-around garbage and are cropped
    by the caller; every vector store inside the kernel is unmasked.
    """
    x = x_ref[...].astype(jnp.float32)
    Ho = o_ref.shape[1]
    W = x_ref.shape[2]
    v = x[:, 0:Ho, :] + 2.0 * x[:, 1:1 + Ho, :] + x[:, 2:2 + Ho, :]
    # out[..., w] = v[..., w + 2] - v[..., w]   (single XLU lane rotation).
    out = pltpu.roll(v, shift=W - 2, axis=2) - v
    o_ref[...] = out.astype(o_ref.dtype)


def deno_forward(x, *, block_budget_bytes=3 * 1024 * 1024):
    """x: (N, C, H, W) float array with C >= 3. Returns (N, 3, H-2, W-2)."""
    N, C, H, W = x.shape
    assert C >= 3, "DENO uses channels 0, 1, 2"
    assert jnp.issubdtype(x.dtype, jnp.floating), "DENO expects a float input"
    Ho, Wo = H - 2, W - 2
    M = N * 3

    # Collapse (batch, channel) into one fat leading axis: fewer grid steps,
    # larger contiguous DMAs than a (N, 3) grid of (1, 1, H, W) blocks.
    x3 = x[:, :3, :, :].reshape(M, H, W)

    # Lane-dense output path when W is a multiple of 128 (unmasked stores,
    # crop the 2 wrapped columns outside). Otherwise (small / unaligned W,
    # e.g. the 16x16 test, where a row fits in one vreg anyway) use the
    # valid-width slice path.
    lane_dense = (W % 128 == 0)
    W_out = W if lane_dense else Wo
    kernel = _deno_kernel_full if lane_dense else _deno_kernel_valid

    # Choose how many (batch, channel) slices per block so the double-buffered
    # input + output blocks stay well inside the default scoped VMEM limit on
    # every generation (16 MiB v5e, 32 MiB v6e/v7x).
    itemsize = jnp.dtype(x.dtype).itemsize
    per_slice_bytes = (H * W + Ho * W_out) * itemsize
    tb = max(1, min(M, block_budget_bytes // max(per_slice_bytes, 1)))
    # Keep at least two grid steps when possible so the "parallel" axis can be
    # sharded across the two TensorCores of a v7x chip.
    if M > 1:
        tb = min(tb, pl.cdiv(M, 2))
    grid_m = pl.cdiv(M, tb)
    M_pad = grid_m * tb
    if M_pad != M:
        x3 = jnp.pad(x3, ((0, M_pad - M), (0, 0), (0, 0)))
    # TODO(synk): for frames so large that a single (1, H, W) slice blows the
    # VMEM budget, add H-strip tiling with a 2-row halo instead of full frames.

    out = pl.pallas_call(
        kernel,
        out_shape=jax.ShapeDtypeStruct((M_pad, Ho, W_out), x.dtype),
        grid_spec=pltpu.PrefetchScalarGridSpec(
            num_scalar_prefetch=0,
            grid=(grid_m,),
            in_specs=[pl.BlockSpec((tb, H, W), lambda m: (m, 0, 0))],
            out_specs=pl.BlockSpec((tb, Ho, W_out), lambda m: (m, 0, 0)),
        ),
        compiler_params=pltpu.CompilerParams(
            dimension_semantics=("parallel",),
        ),
        cost_estimate=pl.CostEstimate(
            flops=6 * M * Ho * Wo,
            transcendentals=0,
            bytes_accessed=itemsize * (M * H * W + M * Ho * W_out),
        ),
    )(x3)

    return out[:M, :, :Wo].reshape(N, 3, Ho, Wo)


def _reference(x):
    # Pure-JAX reference using lax.conv (matches F.conv2d semantics).
    kernel = jnp.array([[-1.0, 0.0, 1.0],
                        [-2.0, 0.0, 2.0],
                        [-1.0, 0.0, 1.0]], dtype=x.dtype).reshape(1, 1, 3, 3)
    outs = []
    for c in range(3):
        xc = x[:, c:c + 1]  # (N, 1, H, W)
        outs.append(
            jax.lax.conv_general_dilated(
                xc, kernel, window_strides=(1, 1), padding="VALID",
                dimension_numbers=("NCHW", "OIHW", "NCHW"),
            )
        )
    return jnp.concatenate(outs, axis=1)


if __name__ == "__main__":
    key = jax.random.PRNGKey(0)
    N, C, H, W = 2, 4, 16, 16
    x = jax.random.normal(key, (N, C, H, W), dtype=jnp.float32)

    out = deno_forward(x)
    out = jax.block_until_ready(out)

    ref = _reference(x)
    assert out.shape == (N, 3, H - 2, W - 2)
    assert jnp.allclose(out, ref, atol=1e-5, rtol=1e-5)

    print("KERNEL_OK")
</pallas_src>

<mosaic_0001>
module attributes {stable_mosaic.version = 11 : i64} {
  func.func @_deno_kernel_valid(%arg0: i32, %arg1: memref<3x16x16xf32, #tpu.memory_space<vmem>>, %arg2: memref<3x14x14xf32, #tpu.memory_space<vmem>>) attributes {dimension_semantics = [#tpu.dimension_semantics<parallel>], iteration_bounds = array<i64: 2>, scalar_prefetch = 0 : i64, scratch_operands = 0 : i64, tpu.core_type = #tpu.core_type<tc>, window_params = [{transform_indices = @transform_0, window_bounds = array<i64: 3, 16, 16>}, {transform_indices = @transform_1, window_bounds = array<i64: 3, 14, 14>}]} {
    %c0 = arith.constant 0 : index
    %c0_0 = arith.constant 0 : index
    %c0_1 = arith.constant 0 : index
    %0 = vector.load %arg1[%c0, %c0_0, %c0_1] : memref<3x16x16xf32, #tpu.memory_space<vmem>>, vector<3x16x16xf32>
    %1 = vector.extract_strided_slice %0 {offsets = [0, 0, 0], sizes = [3, 14, 16], strides = [1, 1, 1]} : vector<3x16x16xf32> to vector<3x14x16xf32>
    %2 = vector.extract_strided_slice %0 {offsets = [0, 1, 0], sizes = [3, 14, 16], strides = [1, 1, 1]} : vector<3x16x16xf32> to vector<3x14x16xf32>
    %cst = arith.constant 2.000000e+00 : f32
    %3 = vector.broadcast %cst : f32 to vector<3x14x16xf32>
    %4 = arith.mulf %3, %2 : vector<3x14x16xf32>
    %5 = arith.addf %1, %4 : vector<3x14x16xf32>
    %6 = vector.extract_strided_slice %0 {offsets = [0, 2, 0], sizes = [3, 14, 16], strides = [1, 1, 1]} : vector<3x16x16xf32> to vector<3x14x16xf32>
    %7 = arith.addf %5, %6 : vector<3x14x16xf32>
    %8 = vector.extract_strided_slice %7 {offsets = [0, 0, 2], sizes = [3, 14, 14], strides = [1, 1, 1]} : vector<3x14x16xf32> to vector<3x14x14xf32>
    %9 = vector.extract_strided_slice %7 {offsets = [0, 0, 0], sizes = [3, 14, 14], strides = [1, 1, 1]} : vector<3x14x16xf32> to vector<3x14x14xf32>
    %10 = arith.subf %8, %9 : vector<3x14x14xf32>
    %c0_2 = arith.constant 0 : index
    %c0_3 = arith.constant 0 : index
    %c0_4 = arith.constant 0 : index
    %11 = vector.load %arg2[%c0_2, %c0_3, %c0_4] : memref<3x14x14xf32, #tpu.memory_space<vmem>>, vector<3x14x14xf32>
    tpu.vector_store %arg2[%c0_2, %c0_3, %c0_4], %10 {strides = array<i32>} : memref<3x14x14xf32, #tpu.memory_space<vmem>>, vector<3x14x14xf32>,
    return
  }
  func.func @transform_0(%arg0: i32) -> (i32, i32, i32) {
    %c0_i32 = arith.constant 0 : i32
    %c0_i32_0 = arith.constant 0 : i32
    %c0_i32_1 = arith.constant 0 : i32
    return %arg0, %c0_i32, %c0_i32_0 : i32, i32, i32
  }
  func.func @transform_1(%arg0: i32) -> (i32, i32, i32) {
    %c0_i32 = arith.constant 0 : i32
    %c0_i32_0 = arith.constant 0 : i32
    %c0_i32_1 = arith.constant 0 : i32
    return %arg0, %c0_i32, %c0_i32_0 : i32, i32, i32
  }
}

</mosaic_0001>

<bundles_post_ra>
// kernel: tpu_custom_call.1
= control target key start
LH: loop header
LB: loop body
LE: loop exit
PB: predicated region body
PF: predicated region fallthrough
CT: control target
= control target key end

     0   :  { %6 = vsyncpa [#allocation3], 0  ;;  %s674_s0 = inlined_call_operand.hbm [shape: f32[6,16,16], index: 0, kind: input, shape index: {}]   ;;  %s675_s1 = inlined_call_operand.hbm [shape: f32[6,14,14], index: 1, kind: output, shape index: {}]  }
   0x1   :  { %8 = vsyncpa [#allocation3 + $0x1], 0 }
   0x2   :  { %9 = vsyncpa [#allocation4], 0 }
   0x3   :  { %11 = vsyncpa [#allocation4 + $0x1], 0  ;;  %s544_s6 = smov 0   ;;  %s546_s7 = smov 0  }
   0x4   :  { %s548_s8 = smov 0   ;;  %s550_s9 = smov 0  }
   0x5 LB: > { %s565_s10 = sadd.s32 4294967295, %s526_s9   ;;  %s360_s11 = sadd.s32 4294967294, %s526_s9   ;;  %s526_s9 = sphi %s550_s9, %s683_s9   ;;  %s522_s8 = sphi %s548_s8, %s682_s8   ;;  %s518_s7 = sphi %s546_s7, %s681_s7   ;;  %s514_s6 = sphi %s544_s6, %s680_s6  }
   0x6   : > { %s569_s12 = sadd.s32 1, %s526_s9   ;;  %s24_s13 = sadd.s32 1, %s522_s8 }
   0x7   : > { %s21_s14 = ssub.s32 %s526_s9, %s569_s12  ;;  %p31_p0 = scmp.ne.s32.totalorder %s522_s8, %s518_s7 }
   0x8   : > { %p22_p1 = scmp.eq.s32.totalorder %s21_s14, 0  ;;  %p32_p2 = scmp.eq.s32.totalorder %s526_s9, 0 }
   0x9   : > { %p37_p3 = scmp.ne.s32.totalorder %s518_s7, %s514_s6  ;;  %p38_p4 = scmp.eq.s32.totalorder %s565_s10, 0 }
   0xa   : > { %s581_s15 = scalar_select %p22_p1, %s522_s8, %s24_s13  }
   0xb   : > { %p33_p5 = por %p32_p2, %p31_p0  ;;  %p583_p6 = por %p38_p4, %p37_p3 }
   0xc   : > { %p61_p7 = scmp.eq.s32.totalorder %s565_s10, 1  ;;  %p67_p8 = scmp.eq.s32.totalorder %s360_s11, 1 }
   0xd   : > { %p362_p9 = scmp.ge.s32.totalorder %s526_s9, 2  ;;  %p390_p10 = scmp.lt.s32.totalorder %s526_s9, 2 }
   0xe   : > { %p590_p11 = por %p61_p7, %p31_p0  ;;  %p594_p12 = por %p67_p8, %p37_p3 }
   0xf   : > { %s87_s19 = sand.u32 1, %s522_s8   ;;  %s374_s20 = smul.u32 48, %s526_s9 }
  0x10   : > { %s376_s21 = smul.u32 48, %s87_s19  ;;  %p603_p13 = pnand %p390_p10, %p33_p5 }
  0x11   : > { %s97_s24 = scalar_lea.hbm %s674_s0, %s374_s20  ;;  %s88_s29 = scalar_lea.sflag [#allocation3], %s87_s19 }
  0x12   : > { %s98_s26 = sshll.u32 %s97_s24, 4  ;;  %s91_s27 = scalar_lea.vmem [#allocation2], %s376_s21  ;;  %s99_s26 = int_to_ptr.hbm [resolvable:$true] %s98_s26 }
  0x13   : > { %s100_s28 = sshll.u32 %s91_s27, 4  ;;  %s430_s30 = sshra.s32 %s99_s26, 4  ;;  %s101_s28 = int_to_ptr.vmem [resolvable:$true] %s100_s28  ;;  %s431_s30 = int_to_ptr.hbm [resolvable:$true] %s430_s30 }
  0x14   : > { %s432_s2 = scalar_lea.hbm %s431_s30, 48  ;;  %p434_p1 = pneg %p603_p13 }
  0x15   : > { %p433_p0 = scmp.ne.s32.totalorder %s431_s30, %s432_s2  ;;  %s437_s5 = scalar_lea.hbm %s674_s0, 96 }
  0x16   : > { %p438_p4 = scmp.lt.s32.totalorder %s431_s30, %s674_s0  ;;  %p439_p5 = scmp.lt.s32.totalorder %s437_s5, %s432_s2 }
  0x17   : > { %p435_p2 = pnand %p434_p1, %p433_p0 }
  0x18   : > { %p440_p7 = por %p439_p5, %p438_p4 }
  0x19   : > { %p436_p3 = pneg %p435_p2 }
  0x1b   : > { %p441_p8 = pnand %p440_p7, %p436_p3 }
  0x1d   : > { %444 = shalt.err (!%p441_p8)
}
  0x1e   : > { %s528_s14 = smov 128   ;;  %s529_s19 = smov 8  }
  0x1f   : > { %385 = dma.hbm_to_vmem [thread:$0]  (!%p603_p13), %s99_s26, 768, %s101_s28, %s88_s29, %s528_s14, %s528_s14, %s529_s19  }
  0x20   : > { %p365_p10 = scmp.ge.s32.totalorder %s526_s9, 1  ;;  %p108_p0 = scmp.lt.s32.totalorder %s526_s9, 3 }
  0x22   : > { %p109_p1 = pnand %p365_p10, %p108_p0 }
  0x23   : > { %s620_s20 = sand.u32 (!%p109_p1), 1, %s518_s7  }
  0x24   : > { %112 = sbr.rel (%p109_p1) target bundleno = 304 (0x130), region = 24  ;;  %s115_s22 = scalar_lea.sflag (!%p109_p1), [#allocation3], %s620_s20 }
  0x25   : > { %s377_s21 = smul.u32 (!%p109_p1), 48, %s620_s20 }
  0x27   : > { %s118_s23 = scalar_lea.vmem (!%p109_p1), [#allocation2], %s377_s21 }
  0x29   : > { %505 = dma.done.wait (%p583_p6), %s115_s22, 768  }
  0x2a   : > { %507 = vsyncadd (%p583_p6), %s115_s22, 4294966528  ;;  %v140_v0 = vld [vmem:[%s118_s23] sm:$0xff]  ;;  %v141_v1 = vld [vmem:[%s118_s23 + $0x8] sm:$0xff]  ;;  %vm158_vm0 = vcmask 1046528   ;;  %vm186_vm1 = vcmask 1045504   ;;  %s530_s16 = smov 2  }
  0x2b   : > { %v142_v2 = vld [vmem:[%s118_s23 + $0x10] sm:$0xff]  ;;  %v146_v3 = vmul.f32 2.0, %v140_v0  ;;  %v147_v4 = vmul.f32 2.0, %v141_v1  ;;  %v187_v5 = vrot.slane %v140_v0, 2  ;;  %v188_v6 = vrot.slane %v141_v1, 2  ;;  %v143_v7 = vld [vmem:[%s118_s23 + $0x18] sm:$0xff] }
  0x2c   : > { %v144_v8 = vld [vmem:[%s118_s23 + $0x20] sm:$0xff]  ;;  %v148_v9 = vmul.f32 2.0, %v142_v2  ;;  %v149_v10 = vmul.f32 2.0, %v143_v7  ;;  %v190_v11 = vrot.slane %v142_v2, 2  ;;  %v191_v12 = vrot.slane %v143_v7, 2  ;;  %v145_v13 = vld [vmem:[%s118_s23 + $0x28] sm:$0xff] }
  0x2d   : > { %v159_v14 = vrot.slane %v146_v3, 1  ;;  %v160_v15 = vrot.slane %v147_v4, 1  ;;  %v150_v16 = vmul.f32 2.0, %v144_v8  ;;  %v151_v19 = vmul.f32 2.0, %v145_v13  ;;  %s531_s24 = smov 126   ;;  %s137_s25 = scalar_lea.vmem [#allocation5], %s377_s21 }
  0x2e   : > { %v162_v17 = vrot.slane %v148_v9, 1  ;;  %v163_v18 = vrot.slane %v149_v10, 1  ;;  %v189_v21 = vsel %vm186_vm1, %v187_v5, %v188_v6  ;;  %v193_v23 = vrot.slane %v144_v8, 2  ;;  %s375_s26 = smul.u32 48, %s565_s10  ;;  %s284_s30 = sshll.u32 %s137_s25, 4  ;;  %s285_s30 = int_to_ptr.vmem [resolvable:$true] %s284_s30 }
  0x2f   : > { %v161_v20 = vsel %vm158_vm0, %v159_v14, %v160_v15  ;;  %v165_v22 = vrot.slane %v150_v16, 1  ;;  %v192_v26 = vsel %vm186_vm1, %v190_v11, %v191_v12  ;;  %v166_v27 = vrot.slane %v151_v19, 1  ;;  %s271_s3 = scalar_lea.sflag [#allocation4], %s620_s20  ;;  %s480_s13 = scalar_lea.hbm %s675_s1, 96 }
  0x30   : > { %v174_v24 = vadd.f32 %v161_v20, %v140_v0  ;;  %v164_v25 = vsel %vm158_vm0, %v162_v17, %v163_v18  ;;  %v194_v29 = vrot.slane %v145_v13, 2  ;;  %v175_v35 = vadd.f32 %v160_v15, %v141_v1  ;;  %s283_s29 = scalar_lea.hbm %s675_s1, %s375_s26 }
  0x31   : > { %v176_v28 = vadd.f32 %v164_v25, %v142_v2  ;;  %v167_v31 = vsel %vm158_vm0, %v165_v22, %v166_v27  ;;  %v177_v36 = vadd.f32 %v163_v18, %v143_v7  ;;  %v179_v38 = vadd.f32 %v166_v27, %v145_v13  ;;  %s286_s2 = sshll.u32 %s283_s29, 4  ;;  %s287_s2 = int_to_ptr.hbm [resolvable:$true] %s286_s2 }
  0x32   : > { %v202_v30 = vadd.f32 %v189_v21, %v174_v24  ;;  %v178_v33 = vadd.f32 %v167_v31, %v144_v8  ;;  %v195_v34 = vsel %vm186_vm1, %v193_v23, %v194_v29  ;;  %v203_v39 = vadd.f32 %v188_v6, %v175_v35  ;;  %s474_s4 = sshra.s32 %s287_s2, 4  ;;  %s475_s4 = int_to_ptr.hbm [resolvable:$true] %s474_s4 }
  0x33   : > { %v204_v32 = vadd.f32 %v192_v26, %v176_v28  ;;  %v205_v40 = vadd.f32 %v191_v12, %v177_v36  ;;  %v207_v41 = vadd.f32 %v194_v29, %v179_v38  ;;  %vm262_vm2 = vcmask 113664   ;;  %s476_s10 = scalar_lea.hbm %s475_s4, 48  ;;  %p481_p3 = scmp.lt.s32.totalorder %s475_s4, %s675_s1 }
  0x34   : > { %214 = vrot.lane.b32.xlu0 %v202_v30, %s530_s16  ;;  %v206_v37 = vadd.f32 %v195_v34, %v178_v33  ;;  %vm264_vm3 = vcmask 111616   ;;  %p477_p6 = scmp.ne.s32.totalorder %s475_s4, %s476_s10  ;;  %p482_p4 = scmp.lt.s32.totalorder %s480_s13, %s476_s10 }
  0x35   : > { %218 = vrot.lane.b32.xlu1 %v204_v32, %s530_s16 }
  0x36   : > { %222 = vrot.lane.b32.xlu2 %v206_v37, %s530_s16  ;;  %p478_p13 = pnand %p477_p6, %p590_p11  ;;  %p483_p5 = por %p482_p4, %p481_p3 }
  0x38   : > { %p479_p2 = pneg %p478_p13 }
  0x3a   : > { %p484_p7 = pnand %p483_p5, %p479_p2 }
  0x3c   : > { %216 = vrot.lane.b32.xlu0 %v203_v39, %s530_s16 }
  0x3d   : > { %220 = vrot.lane.b32.xlu1 %v205_v40, %s530_s16 }
  0x3e   : > { %224 = vrot.lane.b32.xlu2 %v207_v41, %s530_s16 }
  0x90   : > { %v223_v42 = vpop.permute.xlu2 %222 }
  0x91   : > { %v236_v53 = vsub.f32 %v206_v37, %v223_v42 }
  0x98   : > { %v225_v47 = vpop.permute.xlu2 %224 }
  0x99   : > { %v237_v49 = vsub.f32 %v207_v41, %v225_v47 }
  0xa6   : > { %v215_v43 = vpop.permute.xlu0 %214 }
  0xa7   : > { %v232_v44 = vsub.f32 %v202_v30, %v215_v43  ;;  %v219_v45 = vpop.permute.xlu1 %218 }
  0xa8   : > { %v234_v46 = vsub.f32 %v204_v32, %v219_v45 }
  0xa9   : > { %244 = vrot.lane.b32.xlu0 %v232_v44, %s531_s24 }
  0xaa   : > { %248 = vrot.lane.b32.xlu2 %v234_v46, %s531_s24 }
  0xae   : > { %v217_v48 = vpop.permute.xlu0 %216 }
  0xaf   : > { %v233_v50 = vsub.f32 %v203_v39, %v217_v48  ;;  %v221_v51 = vpop.permute.xlu1 %220 }
  0xb0   : > { %v235_v52 = vsub.f32 %v205_v40, %v221_v51 }
  0xb1   : > { %246 = vrot.lane.b32.xlu1 %v233_v50, %s531_s24 }
  0xb2   : > { %250 = vrot.lane.b32.xlu0 %v235_v52, %s531_s24  ;;  %254 = vrot.lane.b32.xlu2 %v237_v49, %s531_s24 }
  0xb9   : > { %252 = vrot.lane.b32.xlu1 %v236_v53, %s531_s24 }
 0x104   : > { %v249_v54 = vpop.permute.xlu2 %248 }
 0x105   : > { %266 = vst.msk [vmem:[%s137_s25 + $0x10] sm:$0xff] %vm262_vm2, %v249_v54 }
 0x10c   : > { %v255_v55 = vpop.permute.xlu2 %254 }
 0x10d   : > { %269 = vst.msk [vmem:[%s137_s25 + $0x28] sm:$0x3f] %vm264_vm3, %v255_v55 }
 0x11b   : > { %v245_v56 = vpop.permute.xlu0 %244 }
 0x11c   : > { %263 = vst.msk [vmem:[%s137_s25] sm:$0xff] %vm262_vm2, %v245_v56 }
 0x123   : > { %v247_v57 = vpop.permute.xlu1 %246 }
 0x124   : > { %265 = vst.msk [vmem:[%s137_s25 + $0x8] sm:$0x3f] %vm264_vm3, %v247_v57  ;;  %v251_v58 = vpop.permute.xlu0 %250 }
 0x125   : > { %267 = vst.msk [vmem:[%s137_s25 + $0x18] sm:$0x3f] %vm264_vm3, %v251_v58 }
 0x12b   : > { %v253_v59 = vpop.permute.xlu1 %252 }
 0x12c   : > { %268 = vst.msk [vmem:[%s137_s25 + $0x20] sm:$0xff] %vm262_vm2, %v253_v59 }
 0x12d   : > { %487 = shalt.err (!%p484_p7)
}
 0x12e   : > { %s532_s20 = smov 128   ;;  %s533_s21 = smov 8  }
 0x12f   : > { %380 = dma.vmem_to_hbm [thread:$0]  (%p590_p11), %s285_s30, 768, %s287_s2, %s271_s3, %s532_s20, %s532_s20, %s533_s21  }
 0x130 PF: > { %s301_s22 = sand.u32 1, %s514_s6   ;;  %p387_p8 = pnand %p362_p9, %p594_p12 }
 0x131   : > { %s302_s23 = scalar_lea.sflag [#allocation4], %s301_s22 }
 0x132   : > { %p388_p10 = pneg %p387_p8 }
 0x134   : > { %509 = dma.done.wait (%p388_p10), %s302_s23, 768  }
 0x135   : > { %511 = vsyncadd (%p388_p10), %s302_s23, 4294966528  ;;  %p14_p0 = scmp.ge.s32.totalorder %s569_s12, 4   ;;  %s680_s6 = smov %s518_s7 }
 0x136   : > { %s681_s7 = smov %s522_s8  ;;  %s682_s8 = smov %s581_s15 }
 0x137   : > { %s683_s9 = smov %s569_s12  ;;  %16 = sbr.rel (!%p14_p0) target bundleno = 5 (0x5), region = 69 }
 0x13c   :  { %308 = vsyncpa [#allocation3], 1 }
 0x13d   :  { %310 = vsyncpa [#allocation3 + $0x1], 1 }
 0x13e   :  { %311 = vsyncpa [#allocation4], 1 }
 0x13f   :  { %313 = vsyncpa [#allocation4 + $0x1], 1 }

</bundles_post_ra>
